<compile_context>
chip_gen: v7x
topology: tpu7x:2x2x1
jax: 0.10.0
libtpu: 0.0.40
codegen_flags: <defaults>
</compile_context>

<pallas_src>
import jax
import jax.numpy as jnp
from jax.experimental import pallas as pl
from jax.experimental.pallas import tpu as pltpu

IN_F, HID_F, OUT_F = 60, 48, 32
PACK = 4                       # batch rows packed per 128-lane output row (4*32=128)
DEFAULT_BLOCK_BATCH = 8192     # batch rows per grid step (=> 2048 packed rows)

PIN, PHID, POUT = PACK * IN_F, PACK * HID_F, PACK * OUT_F   # 240, 192, 128


def _softplus_naive(x):
    # Same (naive) formula as the PyTorch module: log(1 + exp(rho)).
    # NOTE: overflows for rho >~ 88 in f32, exactly like the reference module.
    return jnp.log(1.0 + jnp.exp(x))


def _round_up(n, m):
    return ((n + m - 1) // m) * m


def _block_diag4(w):
    """w: (in, out) -> block-diagonal (4*in, 4*out) with w repeated on the diagonal."""
    in_f, out_f = w.shape
    eye = jnp.eye(PACK, dtype=w.dtype)
    return jnp.einsum("ij,kc->ikjc", eye, w).reshape(PACK * in_f, PACK * out_f)


# ---------------------------------------------------------------------------
# Reparameterization + packed-weight construction (plain JAX, tiny tensors).
# ---------------------------------------------------------------------------
def reference_sample(params, eps):
    """Sampled weights in PyTorch [out, in] layout."""
    w1 = params["w1_mu"] + _softplus_naive(params["w1_rho"]) * eps["w1"]
    b1 = params["b1_mu"] + _softplus_naive(params["b1_rho"]) * eps["b1"]
    w2 = params["w2_mu"] + _softplus_naive(params["w2_rho"]) * eps["w2"]
    b2 = params["b2_mu"] + _softplus_naive(params["b2_rho"]) * eps["b2"]
    return w1, b1, w2, b2


def sample_and_pack_weights(params, eps):
    """Sampled weights laid out for the packed forward kernel.

    Returns:
      w1b: (240, 192) bf16 block-diagonal [in, out] layer-1 weights
      b1b: (1, 192)   f32  layer-1 bias tiled 4x
      w2b: (192, 128) bf16 block-diagonal [in, out] layer-2 weights
      b2b: (1, 128)   f32  layer-2 bias tiled 4x
    """
    w1, b1, w2, b2 = reference_sample(params, eps)
    w1b = _block_diag4(w1.T).astype(jnp.bfloat16)          # (240, 192)
    w2b = _block_diag4(w2.T).astype(jnp.bfloat16)          # (192, 128)
    b1b = jnp.tile(b1, (PACK,)).reshape(1, PHID)            # (1, 192) f32
    b2b = jnp.tile(b2, (PACK,)).reshape(1, POUT)            # (1, 128) f32
    return w1b, b1b, w2b, b2b


# ---------------------------------------------------------------------------
# Forward kernel: batch-tiled, weights resident, packed (4 rows / 128 lanes) output.
# ---------------------------------------------------------------------------
def _forward_kernel(x_ref, w1_ref, b1_ref, w2_ref, b2_ref, out_ref):
    # x_ref: (tbp, 240) f32 -- 4 batch rows concatenated per packed row.
    x = x_ref[...].astype(jnp.bfloat16)                     # in-kernel cast (VPU, free)
    # Block-diagonal weights => h keeps the packed layout: (tbp, 192) f32.
    h = jnp.dot(x, w1_ref[...], preferred_element_type=jnp.float32)
    h = jax.nn.sigmoid(h + b1_ref[...])                     # f32 bias + sigmoid (EUP)
    # Second layer, packed output directly: (tbp, 128) f32, lane-dense store.
    y = jnp.dot(h.astype(jnp.bfloat16), w2_ref[...],
                preferred_element_type=jnp.float32)
    out_ref[...] = (y + b2_ref[...]).astype(out_ref.dtype)


def bnn_forward(x, params, eps, *, block_batch=DEFAULT_BLOCK_BATCH):
    """x: (B, 60) float32. params/eps in PyTorch layout. Returns (B, 32) float32."""
    batch = x.shape[0]

    # Reparameterization + packing once, in plain JAX (fuses into one tiny op).
    w1b, b1b, w2b, b2b = sample_and_pack_weights(params, eps)

    # Pack 4 batch rows per row of x via a free contiguous reshape. Only pad when
    # batch is not a multiple of 4 (<= 3 extra rows); tile remainders are handled by
    # Pallas' masked partial last block, not by padding.
    batch_p = _round_up(batch, PACK)
    if batch_p != batch:
        x = jnp.pad(x, ((0, batch_p - batch), (0, 0)))
    bp4 = batch_p // PACK
    xp = x.reshape(bp4, PIN)                                 # (B/4, 240), no data movement

    # Tile selection (packed rows per grid step).
    if bp4 <= 8:
        tbp = bp4                                            # single full block
    else:
        tbp = max(block_batch // PACK, 8)
        # Cap so large batches get >= 4 grid steps (v7x: 2 TCs split the batch).
        tbp = min(tbp, _round_up(pl.cdiv(bp4, 4), 8))
    grid = pl.cdiv(bp4, tbp)

    cost = pl.CostEstimate(
        flops=2 * bp4 * (PIN * PHID + PHID * POUT),
        transcendentals=bp4 * PHID,                          # sigmoid -> exp
        bytes_accessed=bp4 * 4 * (PIN + POUT)                # streamed x + packed out
                       + 2 * (PIN * PHID + PHID * POUT)      # bf16 weights (resident)
                       + 4 * (PHID + POUT),                  # f32 biases
    )

    out_packed = pl.pallas_call(
        _forward_kernel,
        out_shape=jax.ShapeDtypeStruct((bp4, POUT), jnp.float32),
        grid=(grid,),
        in_specs=[
            pl.BlockSpec((tbp, PIN), lambda i: (i, 0)),      # streamed x tile (f32)
            pl.BlockSpec((PIN, PHID), lambda i: (0, 0)),     # resident packed weights
            pl.BlockSpec((1, PHID), lambda i: (0, 0)),
            pl.BlockSpec((PHID, POUT), lambda i: (0, 0)),
            pl.BlockSpec((1, POUT), lambda i: (0, 0)),
        ],
        out_specs=pl.BlockSpec((tbp, POUT), lambda i: (i, 0)),
        compiler_params=pltpu.CompilerParams(
            dimension_semantics=("parallel",),               # v7x: 2 TCs split the grid
        ),
        cost_estimate=cost,
    )(xp, w1b, b1b, w2b, b2b)

    # (B/4, 128) -> (B, 32): contiguous (free) unpack, then drop any pad rows.
    return out_packed.reshape(batch_p, OUT_F)[:batch]


# ---------------------------------------------------------------------------
# Parameter / epsilon construction (PyTorch layout) and XLA reference.
# ---------------------------------------------------------------------------
def init_params():
    # Matches Linear_BBB.__init__: all mu / rho parameters initialized to zero.
    return {
        "w1_mu": jnp.zeros((HID_F, IN_F), jnp.float32),
        "w1_rho": jnp.zeros((HID_F, IN_F), jnp.float32),
        "b1_mu": jnp.zeros((HID_F,), jnp.float32),
        "b1_rho": jnp.zeros((HID_F,), jnp.float32),
        "w2_mu": jnp.zeros((OUT_F, HID_F), jnp.float32),
        "w2_rho": jnp.zeros((OUT_F, HID_F), jnp.float32),
        "b2_mu": jnp.zeros((OUT_F,), jnp.float32),
        "b2_rho": jnp.zeros((OUT_F,), jnp.float32),
    }


def sample_eps(key):
    k1, k2, k3, k4 = jax.random.split(key, 4)
    return {
        "w1": jax.random.normal(k1, (HID_F, IN_F), jnp.float32),
        "b1": jax.random.normal(k2, (HID_F,), jnp.float32),
        "w2": jax.random.normal(k3, (OUT_F, HID_F), jnp.float32),
        "b2": jax.random.normal(k4, (OUT_F,), jnp.float32),
    }


def reference_forward_matched(x, w1, b1, w2, b2):
    """XLA forward mirroring the kernel's precision policy (bf16 MXU feeds, f32 acc),
    consuming sampled weights in PyTorch [out, in] layout."""
    xb = x.astype(jnp.bfloat16)
    h = jnp.dot(xb, w1.T.astype(jnp.bfloat16), preferred_element_type=jnp.float32) + b1
    h = jax.nn.sigmoid(h)
    y = jnp.dot(h.astype(jnp.bfloat16), w2.T.astype(jnp.bfloat16),
                preferred_element_type=jnp.float32) + b2
    return y


if __name__ == "__main__":
    key = jax.random.PRNGKey(0)
    kx, keps, kx2, kx3 = jax.random.split(key, 4)

    params = init_params()
    eps = sample_eps(keps)
    w1, b1, w2, b2 = reference_sample(params, eps)

    # --- small batch, divisible by 4 (single-block path) ---
    x = jax.random.normal(kx, (8, IN_F), jnp.float32)
    out = jax.block_until_ready(bnn_forward(x, params, eps))
    ref = reference_forward_matched(x, w1, b1, w2, b2)
    assert out.shape == (8, OUT_F), out.shape
    assert bool(jnp.all(jnp.isfinite(out))), "non-finite output"
    assert jnp.allclose(out, ref, atol=1e-2, rtol=1e-2), "forward mismatch vs reference"

    # --- batch not a multiple of 4 (tiny pad-to-4 path) ---
    x5 = jax.random.normal(kx2, (5, IN_F), jnp.float32)
    out5 = jax.block_until_ready(bnn_forward(x5, params, eps))
    ref5 = reference_forward_matched(x5, w1, b1, w2, b2)
    assert out5.shape == (5, OUT_F), out5.shape
    assert jnp.allclose(out5, ref5, atol=1e-2, rtol=1e-2), "padded-batch mismatch"

    # --- multi-step grid with a masked partial last block (no jnp.pad of x) ---
    x100 = jax.random.normal(kx3, (100, IN_F), jnp.float32)
    out100 = jax.block_until_ready(bnn_forward(x100, params, eps, block_batch=64))
    ref100 = reference_forward_matched(x100, w1, b1, w2, b2)
    assert out100.shape == (100, OUT_F), out100.shape
    assert bool(jnp.all(jnp.isfinite(out100))), "non-finite output (tiled path)"
    assert jnp.allclose(out100, ref100, atol=1e-2, rtol=1e-2), "tiled-grid mismatch"

    print("KERNEL_OK")
</pallas_src>

<mosaic_0001>
module attributes {stable_mosaic.version = 11 : i64} {
  func.func @_forward_kernel(%arg0: i32, %arg1: memref<2x240xf32, #tpu.memory_space<vmem>>, %arg2: memref<240x192xbf16, #tpu.memory_space<vmem>>, %arg3: memref<1x192xf32, #tpu.memory_space<vmem>>, %arg4: memref<192x128xbf16, #tpu.memory_space<vmem>>, %arg5: memref<1x128xf32, #tpu.memory_space<vmem>>, %arg6: memref<2x128xf32, #tpu.memory_space<vmem>>) attributes {dimension_semantics = [#tpu.dimension_semantics<parallel>], iteration_bounds = array<i64: 1>, scalar_prefetch = 0 : i64, scratch_operands = 0 : i64, tpu.core_type = #tpu.core_type<tc>, window_params = [{transform_indices = @transform_0, window_bounds = array<i64: 2, 240>}, {pipeline_mode = #tpu.pipeline_mode<synchronous>, transform_indices = @transform_1, window_bounds = array<i64: 240, 192>}, {pipeline_mode = #tpu.pipeline_mode<synchronous>, transform_indices = @transform_2, window_bounds = array<i64: 1, 192>}, {pipeline_mode = #tpu.pipeline_mode<synchronous>, transform_indices = @transform_3, window_bounds = array<i64: 192, 128>}, {pipeline_mode = #tpu.pipeline_mode<synchronous>, transform_indices = @transform_4, window_bounds = array<i64: 1, 128>}, {transform_indices = @transform_5, window_bounds = array<i64: 2, 128>}]} {
    %c0 = arith.constant 0 : index
    %c0_0 = arith.constant 0 : index
    %0 = vector.load %arg1[%c0, %c0_0] : memref<2x240xf32, #tpu.memory_space<vmem>>, vector<2x240xf32>
    %1 = arith.truncf %0 : vector<2x240xf32> to vector<2x240xbf16>
    %c0_1 = arith.constant 0 : index
    %c0_2 = arith.constant 0 : index
    %2 = vector.load %arg2[%c0_1, %c0_2] : memref<240x192xbf16, #tpu.memory_space<vmem>>, vector<240x192xbf16>
    %cst = arith.constant dense<0.000000e+00> : vector<2x192xf32>
    %3 = tpu.matmul %1, %2, %cst {dimension_numbers = #tpu.dot_dimension_numbers<[1], [0], [0], [1], [0, 0, 1, 1], [], []>} : vector<2x240xbf16>, vector<240x192xbf16>, vector<2x192xf32> -> vector<2x192xf32>
    %c0_3 = arith.constant 0 : index
    %c0_4 = arith.constant 0 : index
    %4 = vector.load %arg3[%c0_3, %c0_4] : memref<1x192xf32, #tpu.memory_space<vmem>>, vector<1x192xf32>
    %5 = vector.broadcast %4 : vector<1x192xf32> to vector<2x192xf32>
    %6 = arith.addf %3, %5 : vector<2x192xf32>
    %7 = arith.negf %6 : vector<2x192xf32>
    %8 = math.exp %7 : vector<2x192xf32>
    %cst_5 = arith.constant 1.000000e+00 : f32
    %9 = vector.broadcast %cst_5 : f32 to vector<2x192xf32>
    %10 = arith.addf %9, %8 : vector<2x192xf32>
    %11 = arith.divf %9, %10 : vector<2x192xf32>
    %12 = arith.truncf %11 : vector<2x192xf32> to vector<2x192xbf16>
    %c0_6 = arith.constant 0 : index
    %c0_7 = arith.constant 0 : index
    %13 = vector.load %arg4[%c0_6, %c0_7] : memref<192x128xbf16, #tpu.memory_space<vmem>>, vector<192x128xbf16>
    %cst_8 = arith.constant dense<0.000000e+00> : vector<2x128xf32>
    %14 = tpu.matmul %12, %13, %cst_8 {dimension_numbers = #tpu.dot_dimension_numbers<[1], [0], [0], [1], [0, 0, 1, 1], [], []>} : vector<2x192xbf16>, vector<192x128xbf16>, vector<2x128xf32> -> vector<2x128xf32>
    %c0_9 = arith.constant 0 : index
    %c0_10 = arith.constant 0 : index
    %15 = vector.load %arg5[%c0_9, %c0_10] : memref<1x128xf32, #tpu.memory_space<vmem>>, vector<1x128xf32>
    %16 = vector.broadcast %15 : vector<1x128xf32> to vector<2x128xf32>
    %17 = arith.addf %14, %16 : vector<2x128xf32>
    %c0_11 = arith.constant 0 : index
    %c0_12 = arith.constant 0 : index
    %18 = vector.load %arg6[%c0_11, %c0_12] : memref<2x128xf32, #tpu.memory_space<vmem>>, vector<2x128xf32>
    tpu.vector_store %arg6[%c0_11, %c0_12], %17 {strides = array<i32>} : memref<2x128xf32, #tpu.memory_space<vmem>>, vector<2x128xf32>,
    return
  }
  func.func @transform_0(%arg0: i32) -> (i32, i32) {
    %c0_i32 = arith.constant 0 : i32
    %c0_i32_0 = arith.constant 0 : i32
    return %arg0, %c0_i32 : i32, i32
  }
  func.func @transform_1(%arg0: i32) -> (i32, i32) {
    %c0_i32 = arith.constant 0 : i32
    %c0_i32_0 = arith.constant 0 : i32
    %c0_i32_1 = arith.constant 0 : i32
    return %c0_i32, %c0_i32_0 : i32, i32
  }
  func.func @transform_2(%arg0: i32) -> (i32, i32) {
    %c0_i32 = arith.constant 0 : i32
    %c0_i32_0 = arith.constant 0 : i32
    %c0_i32_1 = arith.constant 0 : i32
    return %c0_i32, %c0_i32_0 : i32, i32
  }
  func.func @transform_3(%arg0: i32) -> (i32, i32) {
    %c0_i32 = arith.constant 0 : i32
    %c0_i32_0 = arith.constant 0 : i32
    %c0_i32_1 = arith.constant 0 : i32
    return %c0_i32, %c0_i32_0 : i32, i32
  }
  func.func @transform_4(%arg0: i32) -> (i32, i32) {
    %c0_i32 = arith.constant 0 : i32
    %c0_i32_0 = arith.constant 0 : i32
    %c0_i32_1 = arith.constant 0 : i32
    return %c0_i32, %c0_i32_0 : i32, i32
  }
  func.func @transform_5(%arg0: i32) -> (i32, i32) {
    %c0_i32 = arith.constant 0 : i32
    %c0_i32_0 = arith.constant 0 : i32
    return %arg0, %c0_i32 : i32, i32
  }
}

</mosaic_0001>

<bundles_post_ra>
// kernel: tpu_custom_call.1
= control target key start
LH: loop header
LB: loop body
LE: loop exit
PB: predicated region body
PF: predicated region fallthrough
CT: control target
= control target key end

     0   :  { %v588_v2 = vmov 0   ;;  %vm228_vm0 = vcmask 916480   ;;  %s779_s0 = inlined_call_operand.vmem [shape: f32[2,240], index: 0, kind: input, shape index: {}]   ;;  %s780_s1 = inlined_call_operand.vmem [shape: bf16[240,192], index: 1, kind: input, shape index: {}]   ;;  %s781_s2 = inlined_call_operand.vmem [shape: f32[1,192], index: 2, kind: input, shape index: {}]   ;;  %s782_s3 = inlined_call_operand.vmem [shape: bf16[192,128], index: 3, kind: input, shape index: {}]   ;;  %s783_s4 = inlined_call_operand.vmem [shape: f32[1,128], index: 4, kind: input, shape index: {}]   ;;  %s784_s5 = inlined_call_operand.hbm [shape: f32[2,128], index: 5, kind: output, shape index: {}]  }
   0x1   :  { %v499_v0 = vld [vmem:[%s780_s1 + $0x4] ss:$8 sps:$4 sm:$0xff]   ;;  %v501_v1 = vld [vmem:[%s780_s1] ss:$8 sps:$4 sm:$0xff]   ;;  %394 = vmatprep.subr.bf16.mxu1 %v588_v2  ;;  %v502_v3 = vld [vmem:[%s780_s1 + $0x14] ss:$8 sps:$4 sm:$0xff]  }
   0x2   :  { %232 = vmatprep.subr.bf16.mxu0 %v499_v0  ;;  %v504_v4 = vld [vmem:[%s780_s1 + $0x10] ss:$8 sps:$4 sm:$0xff]   ;;  %v505_v5 = vld [vmem:[%s780_s1 + $0x24] ss:$8 sps:$4 sm:$0xff]   ;;  %v507_v6 = vld [vmem:[%s780_s1 + $0x20] ss:$8 sps:$4 sm:$0xff]  }
   0x3   :  { %233 = vmatpush1.bf16.msra.mxu0 %v501_v1  ;;  %v508_v7 = vld [vmem:[%s780_s1 + $0x34] ss:$8 sps:$4 sm:$0xff]   ;;  %v510_v8 = vld [vmem:[%s780_s1 + $0x30] ss:$8 sps:$4 sm:$0xff]   ;;  %v511_v9 = vld [vmem:[%s780_s1 + $0x44] ss:$8 sps:$4 sm:$0xff]  }
   0x4   :  { %234 = vmatprep.subr.bf16.mxu0 %v502_v3  ;;  %v513_v10 = vld [vmem:[%s780_s1 + $0x40] ss:$8 sps:$4 sm:$0xff]   ;;  %v514_v11 = vld [vmem:[%s780_s1 + $0x54] ss:$8 sps:$4 sm:$0xff]   ;;  %v516_v12 = vld [vmem:[%s780_s1 + $0x50] ss:$8 sps:$4 sm:$0xff]  }
   0x5   :  { %v517_v13 = vld [vmem:[%s780_s1 + $0x64] ss:$8 sps:$4 sm:$0xff]   ;;  %v449_v14 = vld.sshfl [vmem:[%s779_s0] sm:$0x33 pattern:$0x76325410] }
   0x6   :  { %v31_v15 = vcombine.high %v449_v14, %v449_v14  ;;  %v544_v16 = vld [vmem:[%s782_s3] sm:$0xff]   ;;  %v545_v19 = vld [vmem:[%s782_s3 + $0x8] sm:$0xff]   ;;  %v520_v20 = vld [vmem:[%s780_s1 + $0x74] ss:$8 sps:$4 sm:$0xff]  }
   0x7   :  { %235 = vmatpush1.bf16.msra.mxu0 %v504_v4  ;;  %v519_v17 = vld [vmem:[%s780_s1 + $0x60] ss:$8 sps:$4 sm:$0xff]   ;;  %395 = vmatpush1.bf16.msra.mxu1 %v544_v16  ;;  %v522_v21 = vld [vmem:[%s780_s1 + $0x70] ss:$8 sps:$4 sm:$0xff]   ;;  %v523_v23 = vld [vmem:[%s780_s1 + $0x84] ss:$8 sps:$4 sm:$0xff]  }
   0x8   :  { %236 = vmatprep.subr.bf16.mxu0 %v505_v5  ;;  %v35_v18 = vpack.c.bf16 %v31_v15, %v31_v15  ;;  %396 = vmatprep.subr.bf16.mxu1 %v588_v2  ;;  %v546_v22 = vld [vmem:[%s782_s3 + $0x10] sm:$0xff]  }
   0xa   :  { %480 = vmatprep.mubr.msk.bf16.mxu0 %vm228_vm0, %v35_v18 }
   0xb   :  { %237 = vmatpush1.bf16.msra.mxu0 %v507_v6  ;;  %397 = vmatpush1.bf16.msra.mxu1 %v545_v19 }
   0xc   :  { %238 = vmatprep.subr.bf16.mxu0 %v508_v7  ;;  %398 = vmatprep.subr.bf16.mxu1 %v588_v2 }
   0xf   :  { %239 = vmatpush1.bf16.msra.mxu0 %v510_v8 }
  0x10   :  { %240 = vmatprep.subr.bf16.mxu0 %v511_v9 }
  0x13   :  { %241 = vmatpush1.bf16.msra.mxu0 %v513_v10 }
  0x14   :  { %242 = vmatprep.subr.bf16.mxu0 %v514_v11 }
  0x17   :  { %243 = vmatpush1.bf16.msra.mxu0 %v516_v12 }
  0x18   :  { %244 = vmatprep.subr.bf16.mxu0 %v517_v13 }
  0x1b   :  { %245 = vmatpush1.bf16.msra.mxu0 %v519_v17 }
  0x1c   :  { %246 = vmatprep.subr.bf16.mxu0 %v520_v20 }
  0x1d   :  { %10 = vsyncpa [#allocation3], 0  ;;  %v525_v24 = vld [vmem:[%s780_s1 + $0x80] ss:$8 sps:$4 sm:$0xff]   ;;  %399 = vmatpush1.bf16.msra.mxu1 %v546_v22  ;;  %v547_v25 = vld [vmem:[%s782_s3 + $0x18] sm:$0xff]   ;;  %v34_v38 = vpack.c.bf16 %v449_v14, %v449_v14  ;;  %v68_v47 = vlaneseq  ;;  %vm390_vm1 = vcmask 523264  }
  0x1e   :  { %v526_v26 = vld [vmem:[%s780_s1 + $0x94] ss:$8 sps:$4 sm:$0xff]   ;;  %400 = vmatprep.subr.bf16.mxu1 %v588_v2  ;;  %v528_v27 = vld [vmem:[%s780_s1 + $0x90] ss:$8 sps:$4 sm:$0xff]   ;;  %v529_v28 = vld [vmem:[%s780_s1 + $0xa4] ss:$8 sps:$4 sm:$0xff]  }
  0x1f   :  { %247 = vmatpush1.bf16.msra.mxu0 %v522_v21  ;;  %v531_v29 = vld [vmem:[%s780_s1 + $0xa0] ss:$8 sps:$4 sm:$0xff]   ;;  %v532_v30 = vld [vmem:[%s780_s1 + $0xb4] ss:$8 sps:$4 sm:$0xff]   ;;  %v534_v31 = vld [vmem:[%s780_s1 + $0xb0] ss:$8 sps:$4 sm:$0xff]  }
  0x20   :  { %248 = vmatprep.subr.bf16.mxu0 %v523_v23  ;;  %v535_v32 = vld [vmem:[%s780_s1 + $0xc4] ss:$8 sps:$4 sm:$0xff]   ;;  %v537_v33 = vld [vmem:[%s780_s1 + $0xc0] ss:$8 sps:$4 sm:$0xff]   ;;  %v538_v34 = vld [vmem:[%s780_s1 + $0xd4] ss:$8 sps:$4 sm:$0xff]  }
  0x21   :  { %401 = vmatpush1.bf16.msra.mxu1 %v547_v25  ;;  %v540_v35 = vld [vmem:[%s780_s1 + $0xd0] ss:$8 sps:$4 sm:$0xff]   ;;  %v541_v36 = vld [vmem:[%s780_s1 + $0xe4] ss:$8 sps:$4 sm:$0xff]   ;;  %v543_v37 = vld [vmem:[%s780_s1 + $0xe0] ss:$8 sps:$4 sm:$0xff]  }
  0x22   :  { %402 = vmatprep.subr.bf16.mxu1 %v588_v2  ;;  %v548_v39 = vld [vmem:[%s782_s3 + $0x20] sm:$0xff]   ;;  %v549_v40 = vld [vmem:[%s782_s3 + $0x28] sm:$0xff]   ;;  %v550_v41 = vld [vmem:[%s782_s3 + $0x30] sm:$0xff]   ;;  %v69_v48 = vshrl.u32 %v68_v47, 7  ;;  %s589_s0 = smov [#allocation2]  }
  0x23   :  { %249 = vmatpush1.bf16.msra.mxu0 %v525_v24  ;;  %v551_v42 = vld [vmem:[%s782_s3 + $0x38] sm:$0xff]   ;;  %v552_v43 = vld [vmem:[%s782_s3 + $0x40] sm:$0xff]   ;;  %v553_v44 = vld [vmem:[%s782_s3 + $0x48] sm:$0xff]   ;;  %s441_s28 = sshll.u32 %s589_s0, 4  ;;  %s442_s28 = int_to_ptr.vmem [resolvable:$true] %s441_s28 }
  0x24   :  { %250 = vmatprep.subr.bf16.mxu0 %v526_v26  ;;  %v554_v45 = vld [vmem:[%s782_s3 + $0x50] sm:$0xff]   ;;  %v555_v46 = vld [vmem:[%s782_s3 + $0x58] sm:$0xff]   ;;  %v70_v49 = vsub.s32 0, %v69_v48  ;;  %v66_v50 = vld [vmem:[%s781_s2] sm:$0x3]  ;;  %v74_v51 = vsub.s32 1, %v69_v48  ;;  %p569_p1 = scmp.lt.s32.totalorder %s442_s28, %s442_s28 }
  0x25   :  { %403 = vmatpush1.bf16.msra.mxu1 %v548_v39  ;;  %v483_v6 = vld [vmem:[%s783_s4] ss:$0 sm:$0xff]  ;;  %s564_s29 = scalar_lea.vmem %s442_s28, 32 }
  0x26   :  { %404 = vmatprep.subr.bf16.mxu1 %v588_v2  ;;  %v71_v52 = vrot.slane %v66_v50, %v70_v49  ;;  %v75_v53 = vrot.slane %v66_v50, %v74_v51  ;;  %p565_p0 = scmp.ne.s32.totalorder %s442_s28, %s564_s29  ;;  %p570_p2 = scmp.lt.s32.totalorder %s564_s29, %s564_s29 }
  0x27   :  { %251 = vmatpush1.bf16.msra.mxu0 %v528_v27 }
  0x28   :  { %252 = vmatprep.subr.bf16.mxu0 %v529_v28  ;;  %p571_p3 = por %p570_p2, %p569_p1 }
  0x29   :  { %405 = vmatpush1.bf16.msra.mxu1 %v549_v40 }
  0x2a   :  { %406 = vmatprep.subr.bf16.mxu1 %v588_v2  ;;  %p572_p4 = pnand %p571_p3, %p565_p0 }
  0x2b   :  { %253 = vmatpush1.bf16.msra.mxu0 %v531_v29 }
  0x2c   :  { %254 = vmatprep.subr.bf16.mxu0 %v532_v30 }
  0x2d   :  { %407 = vmatpush1.bf16.msra.mxu1 %v550_v41 }
  0x2e   :  { %408 = vmatprep.subr.bf16.mxu1 %v588_v2 }
  0x2f   :  { %255 = vmatpush1.bf16.msra.mxu0 %v534_v31 }
  0x30   :  { %256 = vmatprep.subr.bf16.mxu0 %v535_v32 }
  0x31   :  { %409 = vmatpush1.bf16.msra.mxu1 %v551_v42 }
  0x32   :  { %410 = vmatprep.subr.bf16.mxu1 %v588_v2 }
  0x33   :  { %257 = vmatpush1.bf16.msra.mxu0 %v537_v33 }
  0x34   :  { %258 = vmatprep.subr.bf16.mxu0 %v538_v34 }
  0x35   :  { %411 = vmatpush1.bf16.msra.mxu1 %v552_v43 }
  0x36   :  { %412 = vmatprep.subr.bf16.mxu1 %v588_v2 }
  0x37   :  { %259 = vmatpush1.bf16.msra.mxu0 %v540_v35 }
  0x38   :  { %260 = vmatprep.subr.bf16.mxu0 %v541_v36 }
  0x39   :  { %413 = vmatpush1.bf16.msra.mxu1 %v553_v44 }
  0x3a   :  { %414 = vmatprep.subr.bf16.mxu1 %v588_v2 }
  0x3b   :  { %261 = vmatpush1.bf16.msra.mxu0 %v543_v37 }
  0x3d   :  { %415 = vmatpush1.bf16.msra.mxu1 %v554_v45 }
  0x3e   :  { %265 = vmatmul.mubr.bf16.vlgmr.msra.gmra.mrb[0].mxu0 %v34_v38  ;;  %416 = vmatprep.subr.bf16.mxu1 %v588_v2 }
  0x41   :  { %417 = vmatpush1.bf16.msra.mxu1 %v555_v46 }
 0x111   :  { %v266_v54 = vpop.f32.mrb[0].mxu0 }
 0x112   :  { %v267_v55 = vadd.f32 %v266_v54, %v71_v52  ;;  %v268_v56 = vpop.f32.mrb[1].mxu0 }
 0x113   :  { %v269_v57 = vadd.f32 %v268_v56, %v75_v53  ;;  %v270_v58 = vpop.f32.mrb[2].mxu0 }
 0x114   :  { %v481_v59 = vmul.f32 -1.442695, %v267_v55  ;;  %v271_v60 = vpop.f32.mrb[3].mxu0 }
 0x115   :  { %v482_v61 = vmul.f32 -1.442695, %v269_v57 }
 0x116   :  { %556 = vpow2.f32 %v481_v59 }
 0x117   :  { %558 = vpow2.f32 %v482_v61 }
 0x120   :  { %v557_v62 = vpop.eup %556 }
 0x121   :  { %v559_v63 = vpop.eup %558  ;;  %v279_v0 = vadd.f32 1.0, %v557_v62 }
 0x122   :  { %v280_v1 = vadd.f32 1.0, %v559_v63 }
 0x123   :  { %560 = vrcp.f32 %v279_v0 }
 0x124   :  { %562 = vrcp.f32 %v280_v1 }
 0x12d   :  { %v561_v2 = vpop.eup %560 }
 0x12e   :  { %v563_v3 = vpop.eup %562  ;;  %v285_v5 = vpack.c.bf16 %v561_v2, %v561_v2 }
 0x12f   :  { %v286_v4 = vpack.c.bf16 %v563_v3, %v563_v3 }
 0x131   :  { %496 = vmatprep.mubr.msk.bf16.mxu1 %vm390_vm1, %v286_v4 }
 0x132   :  { %427 = vmatmul.mubr.bf16.vlgmr.msra.gmra.mrb[0].mxu1 %v285_v5 }
 0x205   :  { %v428_v7 = vpop.f32.mrb[0].mxu1 }
 0x206   :  { %v429_v8 = vadd.f32 %v483_v6, %v428_v7  ;;  %v430_v9 = vpop.f32.mrb[1].mxu1 }
 0x207   :  { %v431_v10 = vpop.f32.mrb[2].mxu1 }
 0x208   :  { %434 = vst [vmem:[#allocation2] sm:$0x3] %v429_v8  ;;  %v432_v11 = vpop.f32.mrb[3].mxu1 }
 0x209   :  { %575 = shalt.err (!%p572_p4)
}
 0x20a   :  { %s576_s4 = scalar_lea.hbm %s784_s5, 32 }
 0x20b   :  { %p577_p5 = scmp.ne.s32.totalorder %s784_s5, %s576_s4  ;;  %p580_p6 = scmp.lt.u32.totalorder %s576_s4, %s784_s5 }
 0x20d   :  { %p582_p7 = pnand %p580_p6, %p577_p5 }
 0x20f   :  { %585 = shalt.err (!%p582_p7)
}
 0x210   :  { %444 = dma.vmem_to_hbm [thread:$0]  %s442_s28, 32, %s784_s5, [#allocation3]  }
 0x211   :  { %586 = dma.done.wait [#allocation3], 32  }
 0x212   :  { %587 = vsyncadd [#allocation3], 4294967264 }
 0x213   :  { %448 = vsyncpa [#allocation3], 1 }

</bundles_post_ra>
